<compile_context>
chip_gen: v6e
topology: v6e:2x2x1
jax: 0.10.0
libtpu: 0.0.40
codegen_flags: <defaults>
</compile_context>

<pallas_src>
import functools

import jax
import jax.numpy as jnp
from jax.experimental import pallas as pl
from jax.experimental.pallas import tpu as pltpu

IN_FEATURES = 2048
OUT_FEATURES = 6
PAD_OUT = 128          # lane-dense output width (>= OUT_FEATURES, multiple of 128)
MAX_TB = 512           # batch tile: 512*2048*4B = 4 MiB per x buffer (fits v5e scoped VMEM)


def _round_up(n, m):
    return ((n + m - 1) // m) * m


def linear_kernel(x_ref, w_ref, b_ref, o_ref):
    # MXU matmul with f32 accumulation + full-lane bias add / store.
    acc = jnp.dot(x_ref[...], w_ref[...], preferred_element_type=jnp.float32)
    o_ref[...] = (acc + b_ref[...]).astype(o_ref.dtype)


@functools.partial(jax.jit, static_argnames=())
def regression_forward(x, w_t, b):
    """x: (B, 2048) f32, w_t: (2048, 6) f32, b: (1, 6) f32 -> (B, 6) f32."""
    B = x.shape[0]

    # Pick a batch tile: at most MAX_TB rows, at least a full sublane multiple.
    TB = min(MAX_TB, _round_up(B, 8))
    B_pad = _round_up(B, TB)
    num_tiles = B_pad // TB

    # Pad the ragged last batch tile with zero rows (sliced off afterwards).
    if B_pad != B:
        x = jnp.pad(x, ((0, B_pad - B), (0, 0)))

    # Lane-dense weight / bias: zero-pad 6 -> 128 output lanes. Under jit with
    # constant params XLA hoists these pads out of the hot path.
    w_pad = jnp.pad(w_t, ((0, 0), (0, PAD_OUT - OUT_FEATURES)))
    b_pad = jnp.pad(b, ((0, 0), (0, PAD_OUT - OUT_FEATURES)))

    out_padded = pl.pallas_call(
        linear_kernel,
        out_shape=jax.ShapeDtypeStruct((B_pad, PAD_OUT), x.dtype),
        grid=(num_tiles,),
        in_specs=[
            # x is streamed tile-by-tile (double-buffered by Pallas).
            pl.BlockSpec((TB, IN_FEATURES), lambda i: (i, 0)),
            # Weight and bias stay resident across all grid steps.
            pl.BlockSpec((IN_FEATURES, PAD_OUT), lambda i: (0, 0)),
            pl.BlockSpec((1, PAD_OUT), lambda i: (0, 0)),
        ],
        out_specs=pl.BlockSpec((TB, PAD_OUT), lambda i: (i, 0)),
        compiler_params=pltpu.CompilerParams(
            dimension_semantics=("parallel",),
        ),
        cost_estimate=pl.CostEstimate(
            flops=2 * B_pad * IN_FEATURES * PAD_OUT,
            transcendentals=0,
            bytes_accessed=(
                B_pad * IN_FEATURES * 4
                + IN_FEATURES * PAD_OUT * 4
                + B_pad * PAD_OUT * 4
            ),
        ),
    )(x, w_pad, b_pad)

    # Strip batch padding and the zero-padded output lanes.
    return out_padded[:B, :OUT_FEATURES]


def init_params(key):
    # Deterministic init mimicking nn.Linear default (uniform +/- 1/sqrt(fan_in)).
    kw, kb = jax.random.split(key)
    bound = 1.0 / (IN_FEATURES ** 0.5)
    # PyTorch weight is (out, in); we store its transpose (in, out) for the kernel.
    w = jax.random.uniform(
        kw, (OUT_FEATURES, IN_FEATURES), jnp.float32, -bound, bound
    )
    b = jax.random.uniform(kb, (OUT_FEATURES,), jnp.float32, -bound, bound)
    return w.T, b.reshape(1, OUT_FEATURES)


if __name__ == "__main__":
    key = jax.random.PRNGKey(0)
    kx, kp = jax.random.split(key)

    batch = 2
    x = jax.random.normal(kx, (batch, IN_FEATURES), jnp.float32)
    w_t, b = init_params(kp)

    out = regression_forward(x, w_t, b)
    out = jax.block_until_ready(out)

    # Reference check against plain JAX (same math as PyTorch nn.Linear).
    ref = x @ w_t + b
    assert out.shape == (batch, OUT_FEATURES)
    assert jnp.allclose(out, ref, atol=1e-4, rtol=1e-4)

    print("KERNEL_OK")
</pallas_src>

<mosaic_0001>
module attributes {stable_mosaic.version = 11 : i64} {
  func.func @linear_kernel(%arg0: i32, %arg1: memref<8x2048xf32, #tpu.memory_space<vmem>>, %arg2: memref<2048x128xf32, #tpu.memory_space<vmem>>, %arg3: memref<1x128xf32, #tpu.memory_space<vmem>>, %arg4: memref<8x128xf32, #tpu.memory_space<vmem>>) attributes {dimension_semantics = [#tpu.dimension_semantics<parallel>], iteration_bounds = array<i64: 1>, scalar_prefetch = 0 : i64, scratch_operands = 0 : i64, tpu.core_type = #tpu.core_type<tc>, window_params = [{transform_indices = @transform_0, window_bounds = array<i64: 8, 2048>}, {pipeline_mode = #tpu.pipeline_mode<synchronous>, transform_indices = @transform_1, window_bounds = array<i64: 2048, 128>}, {pipeline_mode = #tpu.pipeline_mode<synchronous>, transform_indices = @transform_2, window_bounds = array<i64: 1, 128>}, {transform_indices = @transform_3, window_bounds = array<i64: 8, 128>}]} {
    %c0 = arith.constant 0 : index
    %c0_0 = arith.constant 0 : index
    %0 = vector.load %arg1[%c0, %c0_0] : memref<8x2048xf32, #tpu.memory_space<vmem>>, vector<8x2048xf32>
    %c0_1 = arith.constant 0 : index
    %c0_2 = arith.constant 0 : index
    %1 = vector.load %arg2[%c0_1, %c0_2] : memref<2048x128xf32, #tpu.memory_space<vmem>>, vector<2048x128xf32>
    %cst = arith.constant dense<0.000000e+00> : vector<8x128xf32>
    %2 = tpu.matmul %0, %1, %cst {dimension_numbers = #tpu.dot_dimension_numbers<[1], [0], [0], [1], [0, 0, 1, 1], [], []>} : vector<8x2048xf32>, vector<2048x128xf32>, vector<8x128xf32> -> vector<8x128xf32>
    %c0_3 = arith.constant 0 : index
    %c0_4 = arith.constant 0 : index
    %3 = vector.load %arg3[%c0_3, %c0_4] : memref<1x128xf32, #tpu.memory_space<vmem>>, vector<1x128xf32>
    %4 = vector.broadcast %3 : vector<1x128xf32> to vector<8x128xf32>
    %5 = arith.addf %2, %4 : vector<8x128xf32>
    %c0_5 = arith.constant 0 : index
    %c0_6 = arith.constant 0 : index
    %6 = vector.load %arg4[%c0_5, %c0_6] : memref<8x128xf32, #tpu.memory_space<vmem>>, vector<8x128xf32>
    tpu.vector_store %arg4[%c0_5, %c0_6], %5 {strides = array<i32>} : memref<8x128xf32, #tpu.memory_space<vmem>>, vector<8x128xf32>,
    return
  }
  func.func @transform_0(%arg0: i32) -> (i32, i32) {
    %c0_i32 = arith.constant 0 : i32
    %c0_i32_0 = arith.constant 0 : i32
    return %arg0, %c0_i32 : i32, i32
  }
  func.func @transform_1(%arg0: i32) -> (i32, i32) {
    %c0_i32 = arith.constant 0 : i32
    %c0_i32_0 = arith.constant 0 : i32
    %c0_i32_1 = arith.constant 0 : i32
    return %c0_i32, %c0_i32_0 : i32, i32
  }
  func.func @transform_2(%arg0: i32) -> (i32, i32) {
    %c0_i32 = arith.constant 0 : i32
    %c0_i32_0 = arith.constant 0 : i32
    %c0_i32_1 = arith.constant 0 : i32
    return %c0_i32, %c0_i32_0 : i32, i32
  }
  func.func @transform_3(%arg0: i32) -> (i32, i32) {
    %c0_i32 = arith.constant 0 : i32
    %c0_i32_0 = arith.constant 0 : i32
    return %arg0, %c0_i32 : i32, i32
  }
}

</mosaic_0001>

<bundles_post_ra>
// kernel: regression_forward.1
= control target key start
LH: loop header
LB: loop body
LE: loop exit
PB: predicated region body
PF: predicated region fallthrough
CT: control target
= control target key end

     0   :  { %s1981_s1 = inlined_call_operand.vmem [shape: f32[2048,128], index: 1, kind: input, shape index: {}]   ;;  %s1982_s0 = inlined_call_operand.vmem [shape: f32[8,2048], index: 0, kind: input, shape index: {}]   ;;  %s1983_s2 = inlined_call_operand.vmem [shape: f32[1,128], index: 2, kind: input, shape index: {}]   ;;  %s1984_s3 = inlined_call_operand.vmem [shape: f32[8,128], index: 3, kind: output, shape index: {}]  }
   0x1   :  { %v61_v0 = vld [vmem:[%s1981_s1 + $0xf8] sm:$0xff]  ;;  %v60_v4 = vld [vmem:[%s1981_s1 + $0xf0] sm:$0xff]  ;;  %v59_v8 = vld [vmem:[%s1981_s1 + $0xe8] sm:$0xff] }
   0x2   :  { %v93_v1 = vld [vmem:[%s1981_s1 + $0x1f8] sm:$0xff]  ;;  %859 = vmatprep.subr.mxu0 %v61_v0  ;;  %v92_v5 = vld [vmem:[%s1981_s1 + $0x1f0] sm:$0xff]  ;;  %v91_v9 = vld [vmem:[%s1981_s1 + $0x1e8] sm:$0xff] }
   0x3   :  { %v45_v2 = vld [vmem:[%s1981_s1 + $0x78] sm:$0xff]  ;;  %894 = vmatprep.subr.mxu1 %v93_v1  ;;  %v44_v6 = vld [vmem:[%s1981_s1 + $0x70] sm:$0xff]  ;;  %v43_v10 = vld [vmem:[%s1981_s1 + $0x68] sm:$0xff] }
   0x4   :  { %v77_v3 = vld [vmem:[%s1981_s1 + $0x178] sm:$0xff]  ;;  %860 = vmatpush3.msra.mxu0 %v45_v2  ;;  %v76_v7 = vld [vmem:[%s1981_s1 + $0x170] sm:$0xff]  ;;  %v75_v11 = vld [vmem:[%s1981_s1 + $0x168] sm:$0xff] }
   0x5   :  { %895 = vmatpush3.msra.mxu1 %v77_v3  ;;  %861 = vmatprep.subr.mxu0 %v60_v4  ;;  %v58_v12 = vld [vmem:[%s1981_s1 + $0xe0] sm:$0xff]  ;;  %v57_v16 = vld [vmem:[%s1981_s1 + $0xd8] sm:$0xff]  ;;  %v56_v20 = vld [vmem:[%s1981_s1 + $0xd0] sm:$0xff] }
   0x6   :  { %896 = vmatprep.subr.mxu1 %v92_v5  ;;  %862 = vmatpush3.msra.mxu0 %v44_v6  ;;  %v90_v13 = vld [vmem:[%s1981_s1 + $0x1e0] sm:$0xff]  ;;  %v89_v17 = vld [vmem:[%s1981_s1 + $0x1d8] sm:$0xff]  ;;  %v88_v21 = vld [vmem:[%s1981_s1 + $0x1d0] sm:$0xff] }
   0x7   :  { %897 = vmatpush3.msra.mxu1 %v76_v7  ;;  %863 = vmatprep.subr.mxu0 %v59_v8  ;;  %v42_v14 = vld [vmem:[%s1981_s1 + $0x60] sm:$0xff]  ;;  %v41_v18 = vld [vmem:[%s1981_s1 + $0x58] sm:$0xff]  ;;  %v40_v22 = vld [vmem:[%s1981_s1 + $0x50] sm:$0xff] }
   0x8   :  { %898 = vmatprep.subr.mxu1 %v91_v9  ;;  %v74_v15 = vld [vmem:[%s1981_s1 + $0x160] sm:$0xff]  ;;  %864 = vmatpush3.msra.mxu0 %v43_v10  ;;  %v73_v19 = vld [vmem:[%s1981_s1 + $0x158] sm:$0xff]  ;;  %v72_v23 = vld [vmem:[%s1981_s1 + $0x150] sm:$0xff] }
   0x9   :  { %899 = vmatpush3.msra.mxu1 %v75_v11  ;;  %865 = vmatprep.subr.mxu0 %v58_v12  ;;  %v55_v24 = vld [vmem:[%s1981_s1 + $0xc8] sm:$0xff]  ;;  %v54_v28 = vld [vmem:[%s1981_s1 + $0xc0] sm:$0xff]  ;;  %v53_v32 = vld [vmem:[%s1981_s1 + $0xb8] sm:$0xff] }
   0xa   :  { %900 = vmatprep.subr.mxu1 %v90_v13  ;;  %866 = vmatpush3.msra.mxu0 %v42_v14  ;;  %v87_v25 = vld [vmem:[%s1981_s1 + $0x1c8] sm:$0xff]  ;;  %v86_v29 = vld [vmem:[%s1981_s1 + $0x1c0] sm:$0xff]  ;;  %v85_v33 = vld [vmem:[%s1981_s1 + $0x1b8] sm:$0xff] }
   0xb   :  { %901 = vmatpush3.msra.mxu1 %v74_v15  ;;  %867 = vmatprep.subr.mxu0 %v57_v16  ;;  %v39_v26 = vld [vmem:[%s1981_s1 + $0x48] sm:$0xff]  ;;  %v38_v30 = vld [vmem:[%s1981_s1 + $0x40] sm:$0xff]  ;;  %v37_v34 = vld [vmem:[%s1981_s1 + $0x38] sm:$0xff] }
   0xc   :  { %902 = vmatprep.subr.mxu1 %v89_v17  ;;  %868 = vmatpush3.msra.mxu0 %v41_v18  ;;  %v71_v27 = vld [vmem:[%s1981_s1 + $0x148] sm:$0xff]  ;;  %v70_v31 = vld [vmem:[%s1981_s1 + $0x140] sm:$0xff]  ;;  %v69_v35 = vld [vmem:[%s1981_s1 + $0x138] sm:$0xff] }
   0xd   :  { %903 = vmatpush3.msra.mxu1 %v73_v19  ;;  %869 = vmatprep.subr.mxu0 %v56_v20  ;;  %v52_v36 = vld [vmem:[%s1981_s1 + $0xb0] sm:$0xff]  ;;  %v51_v40 = vld [vmem:[%s1981_s1 + $0xa8] sm:$0xff]  ;;  %v50_v44 = vld [vmem:[%s1981_s1 + $0xa0] sm:$0xff] }
   0xe   :  { %904 = vmatprep.subr.mxu1 %v88_v21  ;;  %870 = vmatpush3.msra.mxu0 %v40_v22  ;;  %v84_v37 = vld [vmem:[%s1981_s1 + $0x1b0] sm:$0xff]  ;;  %v83_v41 = vld [vmem:[%s1981_s1 + $0x1a8] sm:$0xff]  ;;  %v82_v45 = vld [vmem:[%s1981_s1 + $0x1a0] sm:$0xff] }
   0xf   :  { %905 = vmatpush3.msra.mxu1 %v72_v23  ;;  %871 = vmatprep.subr.mxu0 %v55_v24  ;;  %v36_v38 = vld [vmem:[%s1981_s1 + $0x30] sm:$0xff]  ;;  %v35_v42 = vld [vmem:[%s1981_s1 + $0x28] sm:$0xff]  ;;  %v34_v46 = vld [vmem:[%s1981_s1 + $0x20] sm:$0xff] }
  0x10   :  { %906 = vmatprep.subr.mxu1 %v87_v25  ;;  %872 = vmatpush3.msra.mxu0 %v39_v26  ;;  %v68_v39 = vld [vmem:[%s1981_s1 + $0x130] sm:$0xff]  ;;  %v67_v43 = vld [vmem:[%s1981_s1 + $0x128] sm:$0xff]  ;;  %v66_v47 = vld [vmem:[%s1981_s1 + $0x120] sm:$0xff] }
  0x11   :  { %907 = vmatpush3.msra.mxu1 %v71_v27  ;;  %873 = vmatprep.subr.mxu0 %v54_v28  ;;  %v49_v48 = vld [vmem:[%s1981_s1 + $0x98] sm:$0xff]  ;;  %v48_v52 = vld [vmem:[%s1981_s1 + $0x90] sm:$0xff]  ;;  %v47_v56 = vld [vmem:[%s1981_s1 + $0x88] sm:$0xff] }
  0x12   :  { %908 = vmatprep.subr.mxu1 %v86_v29  ;;  %874 = vmatpush3.msra.mxu0 %v38_v30  ;;  %v81_v49 = vld [vmem:[%s1981_s1 + $0x198] sm:$0xff]  ;;  %v80_v53 = vld [vmem:[%s1981_s1 + $0x190] sm:$0xff]  ;;  %v79_v57 = vld [vmem:[%s1981_s1 + $0x188] sm:$0xff] }
  0x13   :  { %909 = vmatpush3.msra.mxu1 %v70_v31  ;;  %875 = vmatprep.subr.mxu0 %v53_v32  ;;  %v33_v50 = vld [vmem:[%s1981_s1 + $0x18] sm:$0xff]  ;;  %v32_v54 = vld [vmem:[%s1981_s1 + $0x10] sm:$0xff]  ;;  %v31_v58 = vld [vmem:[%s1981_s1 + $0x8] sm:$0xff] }
  0x14   :  { %910 = vmatprep.subr.mxu1 %v85_v33  ;;  %876 = vmatpush3.msra.mxu0 %v37_v34  ;;  %v65_v51 = vld [vmem:[%s1981_s1 + $0x118] sm:$0xff]  ;;  %v64_v55 = vld [vmem:[%s1981_s1 + $0x110] sm:$0xff]  ;;  %v63_v59 = vld [vmem:[%s1981_s1 + $0x108] sm:$0xff] }
  0x15   :  { %911 = vmatpush3.msra.mxu1 %v69_v35  ;;  %877 = vmatprep.subr.mxu0 %v52_v36  ;;  %v46_v60 = vld [vmem:[%s1981_s1 + $0x80] sm:$0xff]  ;;  %v15_v63 = vld [vmem:[%s1982_s0 + $0x8] sm:$0xff]  ;;  %v17_v2 = vld [vmem:[%s1982_s0 + $0x18] sm:$0xff] }
  0x16   :  { %912 = vmatprep.subr.mxu1 %v84_v37  ;;  %878 = vmatpush3.msra.mxu0 %v36_v38  ;;  %v78_v61 = vld [vmem:[%s1981_s1 + $0x180] sm:$0xff]  ;;  %v125_v3 = vld [vmem:[%s1981_s1 + $0x2f8] sm:$0xff]  ;;  %v16_v5 = vld [vmem:[%s1982_s0 + $0x10] sm:$0xff] }
  0x17   :  { %913 = vmatpush3.msra.mxu1 %v68_v39  ;;  %879 = vmatprep.subr.mxu0 %v51_v40  ;;  %v30_v62 = vld [vmem:[%s1981_s1] sm:$0xff]  ;;  %v157_v4 = vld [vmem:[%s1981_s1 + $0x3f8] sm:$0xff]  ;;  %v124_v8 = vld [vmem:[%s1981_s1 + $0x2f0] sm:$0xff] }
  0x18   :  { %914 = vmatprep.subr.mxu1 %v83_v41  ;;  %880 = vmatpush3.msra.mxu0 %v35_v42  ;;  %v62_v0 = vld [vmem:[%s1981_s1 + $0x100] sm:$0xff]  ;;  %v109_v6 = vld [vmem:[%s1981_s1 + $0x278] sm:$0xff]  ;;  %v156_v9 = vld [vmem:[%s1981_s1 + $0x3f0] sm:$0xff] }
  0x19   :  { %915 = vmatpush3.msra.mxu1 %v67_v43  ;;  %881 = vmatprep.subr.mxu0 %v50_v44  ;;  %v14_v1 = vld [vmem:[%s1982_s0] sm:$0xff]  ;;  %v141_v7 = vld [vmem:[%s1981_s1 + $0x378] sm:$0xff]  ;;  %v108_v10 = vld [vmem:[%s1981_s1 + $0x270] sm:$0xff] }
  0x1a   :  { %916 = vmatprep.subr.mxu1 %v82_v45  ;;  %882 = vmatpush3.msra.mxu0 %v34_v46  ;;  %v140_v11 = vld [vmem:[%s1981_s1 + $0x370] sm:$0xff]  ;;  %v123_v12 = vld [vmem:[%s1981_s1 + $0x2e8] sm:$0xff]  ;;  %v122_v16 = vld [vmem:[%s1981_s1 + $0x2e0] sm:$0xff] }
  0x1b   :  { %917 = vmatpush3.msra.mxu1 %v66_v47  ;;  %883 = vmatprep.subr.mxu0 %v49_v48  ;;  %v155_v13 = vld [vmem:[%s1981_s1 + $0x3e8] sm:$0xff]  ;;  %v154_v17 = vld [vmem:[%s1981_s1 + $0x3e0] sm:$0xff]  ;;  %v121_v20 = vld [vmem:[%s1981_s1 + $0x2d8] sm:$0xff] }
  0x1c   :  { %918 = vmatprep.subr.mxu1 %v81_v49  ;;  %884 = vmatpush3.msra.mxu0 %v33_v50  ;;  %v107_v14 = vld [vmem:[%s1981_s1 + $0x268] sm:$0xff]  ;;  %v106_v18 = vld [vmem:[%s1981_s1 + $0x260] sm:$0xff]  ;;  %v153_v21 = vld [vmem:[%s1981_s1 + $0x3d8] sm:$0xff] }
  0x1d   :  { %919 = vmatpush3.msra.mxu1 %v65_v51  ;;  %885 = vmatprep.subr.mxu0 %v48_v52  ;;  %v139_v15 = vld [vmem:[%s1981_s1 + $0x368] sm:$0xff]  ;;  %v138_v19 = vld [vmem:[%s1981_s1 + $0x360] sm:$0xff]  ;;  %v105_v22 = vld [vmem:[%s1981_s1 + $0x258] sm:$0xff] }
  0x1e   :  { %920 = vmatprep.subr.mxu1 %v80_v53  ;;  %886 = vmatpush3.msra.mxu0 %v32_v54  ;;  %v137_v23 = vld [vmem:[%s1981_s1 + $0x358] sm:$0xff]  ;;  %v120_v24 = vld [vmem:[%s1981_s1 + $0x2d0] sm:$0xff]  ;;  %v119_v28 = vld [vmem:[%s1981_s1 + $0x2c8] sm:$0xff] }
  0x1f   :  { %921 = vmatpush3.msra.mxu1 %v64_v55  ;;  %887 = vmatprep.subr.mxu0 %v47_v56  ;;  %v152_v25 = vld [vmem:[%s1981_s1 + $0x3d0] sm:$0xff]  ;;  %v151_v29 = vld [vmem:[%s1981_s1 + $0x3c8] sm:$0xff]  ;;  %v118_v32 = vld [vmem:[%s1981_s1 + $0x2c0] sm:$0xff] }
  0x20   :  { %922 = vmatprep.subr.mxu1 %v79_v57  ;;  %888 = vmatpush3.msra.mxu0 %v31_v58  ;;  %v104_v26 = vld [vmem:[%s1981_s1 + $0x250] sm:$0xff]  ;;  %v103_v30 = vld [vmem:[%s1981_s1 + $0x248] sm:$0xff]  ;;  %v150_v33 = vld [vmem:[%s1981_s1 + $0x3c0] sm:$0xff] }
  0x21   :  { %923 = vmatpush3.msra.mxu1 %v63_v59  ;;  %889 = vmatprep.subr.mxu0 %v46_v60  ;;  %v136_v27 = vld [vmem:[%s1981_s1 + $0x350] sm:$0xff]  ;;  %v135_v31 = vld [vmem:[%s1981_s1 + $0x348] sm:$0xff]  ;;  %v102_v34 = vld [vmem:[%s1981_s1 + $0x240] sm:$0xff] }
  0x22   :  { %924 = vmatprep.subr.mxu1 %v78_v61  ;;  %890 = vmatpush3.msra.mxu0 %v30_v62  ;;  %v134_v35 = vld [vmem:[%s1981_s1 + $0x340] sm:$0xff]  ;;  %v117_v36 = vld [vmem:[%s1981_s1 + $0x2b8] sm:$0xff]  ;;  %v116_v40 = vld [vmem:[%s1981_s1 + $0x2b0] sm:$0xff] }
  0x23   :  { %357 = vmatprep.mubr.f32.mxu0 %v15_v63  ;;  %925 = vmatpush3.msra.mxu1 %v62_v0  ;;  %v149_v37 = vld [vmem:[%s1981_s1 + $0x3b8] sm:$0xff]  ;;  %v148_v41 = vld [vmem:[%s1981_s1 + $0x3b0] sm:$0xff]  ;;  %v115_v44 = vld [vmem:[%s1981_s1 + $0x2a8] sm:$0xff] }
  0x24   :  { %358 = vmatmul.mubr.f32.vlgmr.msra.gmra.mxu0 %v14_v1  ;;  %427 = vmatprep.mubr.f32.mxu1 %v17_v2  ;;  %v101_v38 = vld [vmem:[%s1981_s1 + $0x238] sm:$0xff]  ;;  %v100_v42 = vld [vmem:[%s1981_s1 + $0x230] sm:$0xff]  ;;  %v147_v45 = vld [vmem:[%s1981_s1 + $0x3a8] sm:$0xff] }
  0x25   :  { %929 = vmatprep.subr.mxu0 %v125_v3  ;;  %964 = vmatprep.subr.mxu1 %v157_v4  ;;  %v133_v39 = vld [vmem:[%s1981_s1 + $0x338] sm:$0xff]  ;;  %v132_v43 = vld [vmem:[%s1981_s1 + $0x330] sm:$0xff]  ;;  %v99_v46 = vld [vmem:[%s1981_s1 + $0x228] sm:$0xff] }
  0x26   :  { %428 = vmatmul.mubr.f32.vlgmr.msra.gmra.mxu1 %v16_v5  ;;  %930 = vmatpush3.msra.mxu0 %v109_v6  ;;  %v131_v47 = vld [vmem:[%s1981_s1 + $0x328] sm:$0xff]  ;;  %v114_v48 = vld [vmem:[%s1981_s1 + $0x2a0] sm:$0xff]  ;;  %v113_v52 = vld [vmem:[%s1981_s1 + $0x298] sm:$0xff] }
  0x27   :  { %965 = vmatpush3.msra.mxu1 %v141_v7  ;;  %931 = vmatprep.subr.mxu0 %v124_v8  ;;  %v146_v49 = vld [vmem:[%s1981_s1 + $0x3a0] sm:$0xff]  ;;  %v145_v53 = vld [vmem:[%s1981_s1 + $0x398] sm:$0xff]  ;;  %v112_v56 = vld [vmem:[%s1981_s1 + $0x290] sm:$0xff] }
  0x28   :  { %966 = vmatprep.subr.mxu1 %v156_v9  ;;  %932 = vmatpush3.msra.mxu0 %v108_v10  ;;  %v98_v50 = vld [vmem:[%s1981_s1 + $0x220] sm:$0xff]  ;;  %v97_v54 = vld [vmem:[%s1981_s1 + $0x218] sm:$0xff]  ;;  %v144_v57 = vld [vmem:[%s1981_s1 + $0x390] sm:$0xff] }
  0x29   :  { %967 = vmatpush3.msra.mxu1 %v140_v11  ;;  %933 = vmatprep.subr.mxu0 %v123_v12  ;;  %v130_v51 = vld [vmem:[%s1981_s1 + $0x320] sm:$0xff]  ;;  %v129_v55 = vld [vmem:[%s1981_s1 + $0x318] sm:$0xff]  ;;  %v96_v58 = vld [vmem:[%s1981_s1 + $0x210] sm:$0xff] }
  0x2a   :  { %968 = vmatprep.subr.mxu1 %v155_v13  ;;  %934 = vmatpush3.msra.mxu0 %v107_v14  ;;  %v128_v59 = vld [vmem:[%s1981_s1 + $0x310] sm:$0xff]  ;;  %v111_v60 = vld [vmem:[%s1981_s1 + $0x288] sm:$0xff]  ;;  %v110_v0 = vld [vmem:[%s1981_s1 + $0x280] sm:$0xff] }
  0x2b   :  { %969 = vmatpush3.msra.mxu1 %v139_v15  ;;  %935 = vmatprep.subr.mxu0 %v122_v16  ;;  %v143_v61 = vld [vmem:[%s1981_s1 + $0x388] sm:$0xff]  ;;  %v142_v1 = vld [vmem:[%s1981_s1 + $0x380] sm:$0xff]  ;;  %v21_v6 = vld [vmem:[%s1982_s0 + $0x38] sm:$0xff] }
  0x2c   :  { %970 = vmatprep.subr.mxu1 %v154_v17  ;;  %936 = vmatpush3.msra.mxu0 %v106_v18  ;;  %v95_v62 = vld [vmem:[%s1981_s1 + $0x208] sm:$0xff]  ;;  %v94_v2 = vld [vmem:[%s1981_s1 + $0x200] sm:$0xff]  ;;  %v189_v7 = vld [vmem:[%s1981_s1 + $0x4f8] sm:$0xff] }
  0x2d   :  { %971 = vmatpush3.msra.mxu1 %v138_v19  ;;  %937 = vmatprep.subr.mxu0 %v121_v20  ;;  %v127_v63 = vld [vmem:[%s1981_s1 + $0x308] sm:$0xff]  ;;  %v126_v4 = vld [vmem:[%s1981_s1 + $0x300] sm:$0xff]  ;;  %v221_v8 = vld [vmem:[%s1981_s1 + $0x5f8] sm:$0xff] }
  0x2e   :  { %972 = vmatprep.subr.mxu1 %v153_v21  ;;  %938 = vmatpush3.msra.mxu0 %v105_v22  ;;  %v19_v3 = vld [vmem:[%s1982_s0 + $0x28] sm:$0xff]  ;;  %v18_v5 = vld [vmem:[%s1982_s0 + $0x20] sm:$0xff]  ;;  %v20_v9 = vld [vmem:[%s1982_s0 + $0x30] sm:$0xff] }
  0x2f   :  { %973 = vmatpush3.msra.mxu1 %v137_v23  ;;  %939 = vmatprep.subr.mxu0 %v120_v24  ;;  %v173_v10 = vld [vmem:[%s1981_s1 + $0x478] sm:$0xff]  ;;  %v188_v12 = vld [vmem:[%s1981_s1 + $0x4f0] sm:$0xff]  ;;  %v187_v16 = vld [vmem:[%s1981_s1 + $0x4e8] sm:$0xff] }
  0x30   :  { %974 = vmatprep.subr.mxu1 %v152_v25  ;;  %940 = vmatpush3.msra.mxu0 %v104_v26  ;;  %v205_v11 = vld [vmem:[%s1981_s1 + $0x578] sm:$0xff]  ;;  %v220_v13 = vld [vmem:[%s1981_s1 + $0x5f0] sm:$0xff]  ;;  %v219_v17 = vld [vmem:[%s1981_s1 + $0x5e8] sm:$0xff] }
  0x31   :  { %975 = vmatpush3.msra.mxu1 %v136_v27  ;;  %941 = vmatprep.subr.mxu0 %v119_v28  ;;  %v172_v14 = vld [vmem:[%s1981_s1 + $0x470] sm:$0xff]  ;;  %v171_v18 = vld [vmem:[%s1981_s1 + $0x468] sm:$0xff]  ;;  %v186_v20 = vld [vmem:[%s1981_s1 + $0x4e0] sm:$0xff] }
  0x32   :  { %976 = vmatprep.subr.mxu1 %v151_v29  ;;  %942 = vmatpush3.msra.mxu0 %v103_v30  ;;  %v204_v15 = vld [vmem:[%s1981_s1 + $0x570] sm:$0xff]  ;;  %v203_v19 = vld [vmem:[%s1981_s1 + $0x568] sm:$0xff]  ;;  %v218_v21 = vld [vmem:[%s1981_s1 + $0x5e0] sm:$0xff] }
  0x33   :  { %977 = vmatpush3.msra.mxu1 %v135_v31  ;;  %943 = vmatprep.subr.mxu0 %v118_v32  ;;  %v170_v22 = vld [vmem:[%s1981_s1 + $0x460] sm:$0xff]  ;;  %v185_v24 = vld [vmem:[%s1981_s1 + $0x4d8] sm:$0xff]  ;;  %v184_v28 = vld [vmem:[%s1981_s1 + $0x4d0] sm:$0xff] }
  0x34   :  { %978 = vmatprep.subr.mxu1 %v150_v33  ;;  %944 = vmatpush3.msra.mxu0 %v102_v34  ;;  %v202_v23 = vld [vmem:[%s1981_s1 + $0x560] sm:$0xff]  ;;  %v217_v25 = vld [vmem:[%s1981_s1 + $0x5d8] sm:$0xff]  ;;  %v216_v29 = vld [vmem:[%s1981_s1 + $0x5d0] sm:$0xff] }
  0x35   :  { %979 = vmatpush3.msra.mxu1 %v134_v35  ;;  %945 = vmatprep.subr.mxu0 %v117_v36  ;;  %v169_v26 = vld [vmem:[%s1981_s1 + $0x458] sm:$0xff]  ;;  %v168_v30 = vld [vmem:[%s1981_s1 + $0x450] sm:$0xff]  ;;  %v183_v32 = vld [vmem:[%s1981_s1 + $0x4c8] sm:$0xff] }
  0x36   :  { %980 = vmatprep.subr.mxu1 %v149_v37  ;;  %946 = vmatpush3.msra.mxu0 %v101_v38  ;;  %v201_v27 = vld [vmem:[%s1981_s1 + $0x558] sm:$0xff]  ;;  %v200_v31 = vld [vmem:[%s1981_s1 + $0x550] sm:$0xff]  ;;  %v215_v33 = vld [vmem:[%s1981_s1 + $0x5c8] sm:$0xff] }
  0x37   :  { %981 = vmatpush3.msra.mxu1 %v133_v39  ;;  %947 = vmatprep.subr.mxu0 %v116_v40  ;;  %v167_v34 = vld [vmem:[%s1981_s1 + $0x448] sm:$0xff]  ;;  %v182_v36 = vld [vmem:[%s1981_s1 + $0x4c0] sm:$0xff]  ;;  %v181_v40 = vld [vmem:[%s1981_s1 + $0x4b8] sm:$0xff] }
  0x38   :  { %982 = vmatprep.subr.mxu1 %v148_v41  ;;  %948 = vmatpush3.msra.mxu0 %v100_v42  ;;  %v199_v35 = vld [vmem:[%s1981_s1 + $0x548] sm:$0xff]  ;;  %v214_v37 = vld [vmem:[%s1981_s1 + $0x5c0] sm:$0xff]  ;;  %v213_v41 = vld [vmem:[%s1981_s1 + $0x5b8] sm:$0xff] }
  0x39   :  { %983 = vmatpush3.msra.mxu1 %v132_v43  ;;  %949 = vmatprep.subr.mxu0 %v115_v44  ;;  %v166_v38 = vld [vmem:[%s1981_s1 + $0x440] sm:$0xff]  ;;  %v165_v42 = vld [vmem:[%s1981_s1 + $0x438] sm:$0xff]  ;;  %v180_v44 = vld [vmem:[%s1981_s1 + $0x4b0] sm:$0xff] }
  0x3a   :  { %984 = vmatprep.subr.mxu1 %v147_v45  ;;  %950 = vmatpush3.msra.mxu0 %v99_v46  ;;  %v198_v39 = vld [vmem:[%s1981_s1 + $0x540] sm:$0xff]  ;;  %v197_v43 = vld [vmem:[%s1981_s1 + $0x538] sm:$0xff]  ;;  %v212_v45 = vld [vmem:[%s1981_s1 + $0x5b0] sm:$0xff] }
  0x3b   :  { %985 = vmatpush3.msra.mxu1 %v131_v47  ;;  %951 = vmatprep.subr.mxu0 %v114_v48  ;;  %v164_v46 = vld [vmem:[%s1981_s1 + $0x430] sm:$0xff]  ;;  %v179_v48 = vld [vmem:[%s1981_s1 + $0x4a8] sm:$0xff] }
  0x3c   :  { %986 = vmatprep.subr.mxu1 %v146_v49  ;;  %952 = vmatpush3.msra.mxu0 %v98_v50  ;;  %v196_v47 = vld [vmem:[%s1981_s1 + $0x530] sm:$0xff]  ;;  %v211_v49 = vld [vmem:[%s1981_s1 + $0x5a8] sm:$0xff] }
  0x3d   :  { %987 = vmatpush3.msra.mxu1 %v130_v51  ;;  %953 = vmatprep.subr.mxu0 %v113_v52  ;;  %v163_v50 = vld [vmem:[%s1981_s1 + $0x428] sm:$0xff]  ;;  %v178_v52 = vld [vmem:[%s1981_s1 + $0x4a0] sm:$0xff] }
  0x3e   :  { %988 = vmatprep.subr.mxu1 %v145_v53  ;;  %954 = vmatpush3.msra.mxu0 %v97_v54  ;;  %v195_v51 = vld [vmem:[%s1981_s1 + $0x528] sm:$0xff]  ;;  %v210_v53 = vld [vmem:[%s1981_s1 + $0x5a0] sm:$0xff] }
  0x3f   :  { %989 = vmatpush3.msra.mxu1 %v129_v55  ;;  %955 = vmatprep.subr.mxu0 %v112_v56  ;;  %v162_v54 = vld [vmem:[%s1981_s1 + $0x420] sm:$0xff]  ;;  %v177_v56 = vld [vmem:[%s1981_s1 + $0x498] sm:$0xff] }
  0x40   :  { %990 = vmatprep.subr.mxu1 %v144_v57  ;;  %956 = vmatpush3.msra.mxu0 %v96_v58  ;;  %v194_v55 = vld [vmem:[%s1981_s1 + $0x520] sm:$0xff]  ;;  %v209_v57 = vld [vmem:[%s1981_s1 + $0x598] sm:$0xff] }
  0x41   :  { %991 = vmatpush3.msra.mxu1 %v128_v59  ;;  %957 = vmatprep.subr.mxu0 %v111_v60  ;;  %v161_v58 = vld [vmem:[%s1981_s1 + $0x418] sm:$0xff]  ;;  %v176_v60 = vld [vmem:[%s1981_s1 + $0x490] sm:$0xff] }
  0x42   :  { %992 = vmatprep.subr.mxu1 %v143_v61  ;;  %958 = vmatpush3.msra.mxu0 %v95_v62  ;;  %v193_v59 = vld [vmem:[%s1981_s1 + $0x518] sm:$0xff]  ;;  %v208_v61 = vld [vmem:[%s1981_s1 + $0x590] sm:$0xff] }
  0x43   :  { %993 = vmatpush3.msra.mxu1 %v127_v63  ;;  %959 = vmatprep.subr.mxu0 %v110_v0  ;;  %v160_v62 = vld [vmem:[%s1981_s1 + $0x410] sm:$0xff]  ;;  %v175_v0 = vld [vmem:[%s1981_s1 + $0x488] sm:$0xff] }
  0x44   :  { %994 = vmatprep.subr.mxu1 %v142_v1  ;;  %960 = vmatpush3.msra.mxu0 %v94_v2  ;;  %v192_v63 = vld [vmem:[%s1981_s1 + $0x510] sm:$0xff]  ;;  %v207_v1 = vld [vmem:[%s1981_s1 + $0x588] sm:$0xff] }
  0x45   :  { %497 = vmatprep.mubr.f32.mxu0 %v19_v3  ;;  %995 = vmatpush3.msra.mxu1 %v126_v4  ;;  %v159_v2 = vld [vmem:[%s1981_s1 + $0x408] sm:$0xff]  ;;  %v174_v4 = vld [vmem:[%s1981_s1 + $0x480] sm:$0xff] }
  0x46   :  { %498 = vmatmul.mubr.f32.vlgmr.msra.gmra.mxu0 %v18_v5  ;;  %567 = vmatprep.mubr.f32.mxu1 %v21_v6  ;;  %v191_v3 = vld [vmem:[%s1981_s1 + $0x508] sm:$0xff]  ;;  %v206_v5 = vld [vmem:[%s1981_s1 + $0x580] sm:$0xff] }
  0x47   :  { %999 = vmatprep.subr.mxu0 %v189_v7  ;;  %1034 = vmatprep.subr.mxu1 %v221_v8  ;;  %v158_v6 = vld [vmem:[%s1981_s1 + $0x400] sm:$0xff]  ;;  %v23_v7 = vld [vmem:[%s1982_s0 + $0x48] sm:$0xff] }
  0x48   :  { %568 = vmatmul.mubr.f32.vlgmr.msra.gmra.mxu1 %v20_v9  ;;  %1000 = vmatpush3.msra.mxu0 %v173_v10  ;;  %v190_v8 = vld [vmem:[%s1981_s1 + $0x500] sm:$0xff]  ;;  %v25_v10 = vld [vmem:[%s1982_s0 + $0x58] sm:$0xff] }
  0x49   :  { %1035 = vmatpush3.msra.mxu1 %v205_v11  ;;  %1001 = vmatprep.subr.mxu0 %v188_v12  ;;  %v22_v9 = vld [vmem:[%s1982_s0 + $0x40] sm:$0xff]  ;;  %v253_v11 = vld [vmem:[%s1981_s1 + $0x6f8] sm:$0xff] }
  0x4a   :  { %1036 = vmatprep.subr.mxu1 %v220_v13  ;;  %1002 = vmatpush3.msra.mxu0 %v172_v14  ;;  %v285_v12 = vld [vmem:[%s1981_s1 + $0x7f8] sm:$0xff]  ;;  %v24_v13 = vld [vmem:[%s1982_s0 + $0x50] sm:$0xff] }
  0x4b   :  { %1037 = vmatpush3.msra.mxu1 %v204_v15  ;;  %1003 = vmatprep.subr.mxu0 %v187_v16  ;;  %v237_v14 = vld [vmem:[%s1981_s1 + $0x678] sm:$0xff]  ;;  %v252_v16 = vld [vmem:[%s1981_s1 + $0x6f0] sm:$0xff] }
  0x4c   :  { %1038 = vmatprep.subr.mxu1 %v219_v17  ;;  %1004 = vmatpush3.msra.mxu0 %v171_v18  ;;  %v269_v15 = vld [vmem:[%s1981_s1 + $0x778] sm:$0xff]  ;;  %v284_v17 = vld [vmem:[%s1981_s1 + $0x7f0] sm:$0xff] }
  0x4d   :  { %1039 = vmatpush3.msra.mxu1 %v203_v19  ;;  %1005 = vmatprep.subr.mxu0 %v186_v20  ;;  %v236_v18 = vld [vmem:[%s1981_s1 + $0x670] sm:$0xff]  ;;  %v251_v20 = vld [vmem:[%s1981_s1 + $0x6e8] sm:$0xff] }
  0x4e   :  { %1040 = vmatprep.subr.mxu1 %v218_v21  ;;  %1006 = vmatpush3.msra.mxu0 %v170_v22  ;;  %v268_v19 = vld [vmem:[%s1981_s1 + $0x770] sm:$0xff]  ;;  %v283_v21 = vld [vmem:[%s1981_s1 + $0x7e8] sm:$0xff] }
  0x4f   :  { %1041 = vmatpush3.msra.mxu1 %v202_v23  ;;  %1007 = vmatprep.subr.mxu0 %v185_v24  ;;  %v235_v22 = vld [vmem:[%s1981_s1 + $0x668] sm:$0xff]  ;;  %v250_v24 = vld [vmem:[%s1981_s1 + $0x6e0] sm:$0xff] }
  0x50   :  { %1042 = vmatprep.subr.mxu1 %v217_v25  ;;  %1008 = vmatpush3.msra.mxu0 %v169_v26  ;;  %v267_v23 = vld [vmem:[%s1981_s1 + $0x768] sm:$0xff]  ;;  %v282_v25 = vld [vmem:[%s1981_s1 + $0x7e0] sm:$0xff] }
  0x51   :  { %1043 = vmatpush3.msra.mxu1 %v201_v27  ;;  %1009 = vmatprep.subr.mxu0 %v184_v28  ;;  %v234_v26 = vld [vmem:[%s1981_s1 + $0x660] sm:$0xff]  ;;  %v249_v28 = vld [vmem:[%s1981_s1 + $0x6d8] sm:$0xff] }
  0x52   :  { %1044 = vmatprep.subr.mxu1 %v216_v29  ;;  %1010 = vmatpush3.msra.mxu0 %v168_v30  ;;  %v266_v27 = vld [vmem:[%s1981_s1 + $0x760] sm:$0xff]  ;;  %v281_v29 = vld [vmem:[%s1981_s1 + $0x7d8] sm:$0xff] }
  0x53   :  { %1045 = vmatpush3.msra.mxu1 %v200_v31  ;;  %1011 = vmatprep.subr.mxu0 %v183_v32  ;;  %v233_v30 = vld [vmem:[%s1981_s1 + $0x658] sm:$0xff]  ;;  %v248_v32 = vld [vmem:[%s1981_s1 + $0x6d0] sm:$0xff] }
  0x54   :  { %1046 = vmatprep.subr.mxu1 %v215_v33  ;;  %1012 = vmatpush3.msra.mxu0 %v167_v34  ;;  %v265_v31 = vld [vmem:[%s1981_s1 + $0x758] sm:$0xff]  ;;  %v280_v33 = vld [vmem:[%s1981_s1 + $0x7d0] sm:$0xff] }
  0x55   :  { %1047 = vmatpush3.msra.mxu1 %v199_v35  ;;  %1013 = vmatprep.subr.mxu0 %v182_v36  ;;  %v232_v34 = vld [vmem:[%s1981_s1 + $0x650] sm:$0xff]  ;;  %v247_v36 = vld [vmem:[%s1981_s1 + $0x6c8] sm:$0xff] }
  0x56   :  { %1048 = vmatprep.subr.mxu1 %v214_v37  ;;  %1014 = vmatpush3.msra.mxu0 %v166_v38  ;;  %v264_v35 = vld [vmem:[%s1981_s1 + $0x750] sm:$0xff]  ;;  %v279_v37 = vld [vmem:[%s1981_s1 + $0x7c8] sm:$0xff] }
  0x57   :  { %1049 = vmatpush3.msra.mxu1 %v198_v39  ;;  %1015 = vmatprep.subr.mxu0 %v181_v40  ;;  %v231_v38 = vld [vmem:[%s1981_s1 + $0x648] sm:$0xff]  ;;  %v246_v40 = vld [vmem:[%s1981_s1 + $0x6c0] sm:$0xff] }
  0x58   :  { %1050 = vmatprep.subr.mxu1 %v213_v41  ;;  %1016 = vmatpush3.msra.mxu0 %v165_v42  ;;  %v263_v39 = vld [vmem:[%s1981_s1 + $0x748] sm:$0xff]  ;;  %v278_v41 = vld [vmem:[%s1981_s1 + $0x7c0] sm:$0xff] }
  0x59   :  { %1051 = vmatpush3.msra.mxu1 %v197_v43  ;;  %1017 = vmatprep.subr.mxu0 %v180_v44  ;;  %v230_v42 = vld [vmem:[%s1981_s1 + $0x640] sm:$0xff]  ;;  %v245_v44 = vld [vmem:[%s1981_s1 + $0x6b8] sm:$0xff] }
  0x5a   :  { %1052 = vmatprep.subr.mxu1 %v212_v45  ;;  %1018 = vmatpush3.msra.mxu0 %v164_v46  ;;  %v262_v43 = vld [vmem:[%s1981_s1 + $0x740] sm:$0xff]  ;;  %v277_v45 = vld [vmem:[%s1981_s1 + $0x7b8] sm:$0xff] }
  0x5b   :  { %1053 = vmatpush3.msra.mxu1 %v196_v47  ;;  %1019 = vmatprep.subr.mxu0 %v179_v48  ;;  %v229_v46 = vld [vmem:[%s1981_s1 + $0x638] sm:$0xff]  ;;  %v244_v48 = vld [vmem:[%s1981_s1 + $0x6b0] sm:$0xff] }
  0x5c   :  { %1054 = vmatprep.subr.mxu1 %v211_v49  ;;  %1020 = vmatpush3.msra.mxu0 %v163_v50  ;;  %v261_v47 = vld [vmem:[%s1981_s1 + $0x738] sm:$0xff]  ;;  %v276_v49 = vld [vmem:[%s1981_s1 + $0x7b0] sm:$0xff] }
  0x5d   :  { %1055 = vmatpush3.msra.mxu1 %v195_v51  ;;  %1021 = vmatprep.subr.mxu0 %v178_v52  ;;  %v228_v50 = vld [vmem:[%s1981_s1 + $0x630] sm:$0xff]  ;;  %v243_v52 = vld [vmem:[%s1981_s1 + $0x6a8] sm:$0xff] }
  0x5e   :  { %1056 = vmatprep.subr.mxu1 %v210_v53  ;;  %1022 = vmatpush3.msra.mxu0 %v162_v54  ;;  %v260_v51 = vld [vmem:[%s1981_s1 + $0x730] sm:$0xff]  ;;  %v275_v53 = vld [vmem:[%s1981_s1 + $0x7a8] sm:$0xff] }
  0x5f   :  { %1057 = vmatpush3.msra.mxu1 %v194_v55  ;;  %1023 = vmatprep.subr.mxu0 %v177_v56  ;;  %v227_v54 = vld [vmem:[%s1981_s1 + $0x628] sm:$0xff]  ;;  %v242_v56 = vld [vmem:[%s1981_s1 + $0x6a0] sm:$0xff] }
  0x60   :  { %1058 = vmatprep.subr.mxu1 %v209_v57  ;;  %1024 = vmatpush3.msra.mxu0 %v161_v58  ;;  %v259_v55 = vld [vmem:[%s1981_s1 + $0x728] sm:$0xff]  ;;  %v274_v57 = vld [vmem:[%s1981_s1 + $0x7a0] sm:$0xff] }
  0x61   :  { %1059 = vmatpush3.msra.mxu1 %v193_v59  ;;  %1025 = vmatprep.subr.mxu0 %v176_v60  ;;  %v226_v58 = vld [vmem:[%s1981_s1 + $0x620] sm:$0xff]  ;;  %v241_v60 = vld [vmem:[%s1981_s1 + $0x698] sm:$0xff] }
  0x62   :  { %1060 = vmatprep.subr.mxu1 %v208_v61  ;;  %1026 = vmatpush3.msra.mxu0 %v160_v62  ;;  %v258_v59 = vld [vmem:[%s1981_s1 + $0x720] sm:$0xff]  ;;  %v273_v61 = vld [vmem:[%s1981_s1 + $0x798] sm:$0xff] }
  0x63   :  { %1061 = vmatpush3.msra.mxu1 %v192_v63  ;;  %1027 = vmatprep.subr.mxu0 %v175_v0  ;;  %v225_v62 = vld [vmem:[%s1981_s1 + $0x618] sm:$0xff]  ;;  %v240_v0 = vld [vmem:[%s1981_s1 + $0x690] sm:$0xff] }
  0x64   :  { %1062 = vmatprep.subr.mxu1 %v207_v1  ;;  %1028 = vmatpush3.msra.mxu0 %v159_v2  ;;  %v257_v63 = vld [vmem:[%s1981_s1 + $0x718] sm:$0xff]  ;;  %v272_v1 = vld [vmem:[%s1981_s1 + $0x790] sm:$0xff] }
  0x65   :  { %1063 = vmatpush3.msra.mxu1 %v191_v3  ;;  %1029 = vmatprep.subr.mxu0 %v174_v4  ;;  %v224_v2 = vld [vmem:[%s1981_s1 + $0x610] sm:$0xff]  ;;  %v239_v4 = vld [vmem:[%s1981_s1 + $0x688] sm:$0xff] }
  0x66   :  { %1064 = vmatprep.subr.mxu1 %v206_v5  ;;  %1030 = vmatpush3.msra.mxu0 %v158_v6  ;;  %v256_v3 = vld [vmem:[%s1981_s1 + $0x710] sm:$0xff]  ;;  %v271_v5 = vld [vmem:[%s1981_s1 + $0x788] sm:$0xff] }
  0x67   :  { %637 = vmatprep.mubr.f32.mxu0 %v23_v7  ;;  %1065 = vmatpush3.msra.mxu1 %v190_v8  ;;  %v223_v6 = vld [vmem:[%s1981_s1 + $0x608] sm:$0xff]  ;;  %v238_v8 = vld [vmem:[%s1981_s1 + $0x680] sm:$0xff] }
  0x68   :  { %638 = vmatmul.mubr.f32.vlgmr.msra.gmra.mxu0 %v22_v9  ;;  %707 = vmatprep.mubr.f32.mxu1 %v25_v10  ;;  %v255_v7 = vld [vmem:[%s1981_s1 + $0x708] sm:$0xff]  ;;  %v270_v9 = vld [vmem:[%s1981_s1 + $0x780] sm:$0xff] }
  0x69   :  { %1069 = vmatprep.subr.mxu0 %v253_v11  ;;  %1104 = vmatprep.subr.mxu1 %v285_v12  ;;  %v222_v10 = vld [vmem:[%s1981_s1 + $0x600] sm:$0xff]  ;;  %v27_v11 = vld [vmem:[%s1982_s0 + $0x68] sm:$0xff] }
  0x6a   :  { %708 = vmatmul.mubr.f32.vlgmr.msra.gmra.mxu1 %v24_v13  ;;  %1070 = vmatpush3.msra.mxu0 %v237_v14  ;;  %v254_v12 = vld [vmem:[%s1981_s1 + $0x700] sm:$0xff]  ;;  %v29_v13 = vld [vmem:[%s1982_s0 + $0x78] sm:$0xff] }
  0x6b   :  { %1105 = vmatpush3.msra.mxu1 %v269_v15  ;;  %1071 = vmatprep.subr.mxu0 %v252_v16  ;;  %v26_v14 = vld [vmem:[%s1982_s0 + $0x60] sm:$0xff]  ;;  %v28_v15 = vld [vmem:[%s1982_s0 + $0x70] sm:$0xff] }
  0x6c   :  { %1106 = vmatprep.subr.mxu1 %v284_v17  ;;  %1072 = vmatpush3.msra.mxu0 %v236_v18 }
  0x6d   :  { %1107 = vmatpush3.msra.mxu1 %v268_v19  ;;  %1073 = vmatprep.subr.mxu0 %v251_v20 }
  0x6e   :  { %1108 = vmatprep.subr.mxu1 %v283_v21  ;;  %1074 = vmatpush3.msra.mxu0 %v235_v22  ;;  %v858_v21 = vld [vmem:[%s1983_s2] ss:$0 sm:$0xff] }
  0x6f   :  { %1109 = vmatpush3.msra.mxu1 %v267_v23  ;;  %1075 = vmatprep.subr.mxu0 %v250_v24 }
  0x70   :  { %1110 = vmatprep.subr.mxu1 %v282_v25  ;;  %1076 = vmatpush3.msra.mxu0 %v234_v26 }
  0x71   :  { %1111 = vmatpush3.msra.mxu1 %v266_v27  ;;  %1077 = vmatprep.subr.mxu0 %v249_v28 }
  0x72   :  { %1112 = vmatprep.subr.mxu1 %v281_v29  ;;  %1078 = vmatpush3.msra.mxu0 %v233_v30 }
  0x73   :  { %1113 = vmatpush3.msra.mxu1 %v265_v31  ;;  %1079 = vmatprep.subr.mxu0 %v248_v32 }
  0x74   :  { %1114 = vmatprep.subr.mxu1 %v280_v33  ;;  %1080 = vmatpush3.msra.mxu0 %v232_v34 }
  0x75   :  { %1115 = vmatpush3.msra.mxu1 %v264_v35  ;;  %1081 = vmatprep.subr.mxu0 %v247_v36 }
  0x76   :  { %1116 = vmatprep.subr.mxu1 %v279_v37  ;;  %1082 = vmatpush3.msra.mxu0 %v231_v38 }
  0x77   :  { %1117 = vmatpush3.msra.mxu1 %v263_v39  ;;  %1083 = vmatprep.subr.mxu0 %v246_v40 }
  0x78   :  { %1118 = vmatprep.subr.mxu1 %v278_v41  ;;  %1084 = vmatpush3.msra.mxu0 %v230_v42 }
  0x79   :  { %1119 = vmatpush3.msra.mxu1 %v262_v43  ;;  %1085 = vmatprep.subr.mxu0 %v245_v44 }
  0x7a   :  { %1120 = vmatprep.subr.mxu1 %v277_v45  ;;  %1086 = vmatpush3.msra.mxu0 %v229_v46 }
  0x7b   :  { %1121 = vmatpush3.msra.mxu1 %v261_v47  ;;  %1087 = vmatprep.subr.mxu0 %v244_v48 }
  0x7c   :  { %1122 = vmatprep.subr.mxu1 %v276_v49  ;;  %1088 = vmatpush3.msra.mxu0 %v228_v50 }
  0x7d   :  { %1123 = vmatpush3.msra.mxu1 %v260_v51  ;;  %1089 = vmatprep.subr.mxu0 %v243_v52 }
  0x7e   :  { %1124 = vmatprep.subr.mxu1 %v275_v53  ;;  %1090 = vmatpush3.msra.mxu0 %v227_v54 }
  0x7f   :  { %1125 = vmatpush3.msra.mxu1 %v259_v55  ;;  %1091 = vmatprep.subr.mxu0 %v242_v56 }
  0x80   :  { %1126 = vmatprep.subr.mxu1 %v274_v57  ;;  %1092 = vmatpush3.msra.mxu0 %v226_v58 }
  0x81   :  { %1127 = vmatpush3.msra.mxu1 %v258_v59  ;;  %1093 = vmatprep.subr.mxu0 %v241_v60 }
  0x82   :  { %1128 = vmatprep.subr.mxu1 %v273_v61  ;;  %1094 = vmatpush3.msra.mxu0 %v225_v62 }
  0x83   :  { %1129 = vmatpush3.msra.mxu1 %v257_v63  ;;  %1095 = vmatprep.subr.mxu0 %v240_v0 }
  0x84   :  { %1130 = vmatprep.subr.mxu1 %v272_v1  ;;  %1096 = vmatpush3.msra.mxu0 %v224_v2 }
  0x85   :  { %1131 = vmatpush3.msra.mxu1 %v256_v3  ;;  %1097 = vmatprep.subr.mxu0 %v239_v4 }
  0x86   :  { %1132 = vmatprep.subr.mxu1 %v271_v5  ;;  %1098 = vmatpush3.msra.mxu0 %v223_v6 }
  0x87   :  { %1133 = vmatpush3.msra.mxu1 %v255_v7  ;;  %1099 = vmatprep.subr.mxu0 %v238_v8 }
  0x88   :  { %1134 = vmatprep.subr.mxu1 %v270_v9  ;;  %1100 = vmatpush3.msra.mxu0 %v222_v10 }
  0x89   :  { %777 = vmatprep.mubr.f32.mxu0 %v27_v11  ;;  %1135 = vmatpush3.msra.mxu1 %v254_v12 }
  0x8a   :  { %847 = vmatprep.mubr.f32.mxu1 %v29_v13  ;;  %778 = vmatmul.mubr.f32.vlgmr.msra.gmra.mxu0 %v26_v14 }
  0x8b   :  { %848 = vmatmul.mubr.f32.vlgmr.msra.gmra.mxu1 %v28_v15 }
  0xe4   :  { %v891_v16 = vpop.f32.mrf.mxu0 }
  0xe6   :  { %v926_v17 = vpop.f32.mrf.mxu1  ;;  %v892_v18 = vpop.f32.mrf.mxu0 }
  0xe7   :  { %v893_v20 = vadd.f32 %v892_v18, %v891_v16 }
  0xe8   :  { %v927_v22 = vpop.f32.mrf.mxu1 }
  0xe9   :  { %v360_v25 = vadd.f32 %v893_v20, %v858_v21  ;;  %v928_v26 = vadd.f32 %v927_v22, %v926_v17 }
  0xeb   :  { %v430_v30 = vadd.f32 %v928_v26, %v360_v25 }
 0x106   :  { %v961_v19 = vpop.f32.mrf.mxu0 }
 0x108   :  { %v996_v23 = vpop.f32.mrf.mxu1  ;;  %v962_v24 = vpop.f32.mrf.mxu0 }
 0x109   :  { %v963_v28 = vadd.f32 %v962_v24, %v961_v19 }
 0x10a   :  { %v997_v29 = vpop.f32.mrf.mxu1 }
 0x10b   :  { %v500_v33 = vadd.f32 %v963_v28, %v430_v30  ;;  %v998_v34 = vadd.f32 %v997_v29, %v996_v23 }
 0x10d   :  { %v570_v37 = vadd.f32 %v998_v34, %v500_v33 }
 0x128   :  { %v1031_v27 = vpop.f32.mrf.mxu0 }
 0x12a   :  { %v1066_v31 = vpop.f32.mrf.mxu1  ;;  %v1032_v32 = vpop.f32.mrf.mxu0 }
 0x12b   :  { %v1033_v35 = vadd.f32 %v1032_v32, %v1031_v27 }
 0x12c   :  { %v1067_v36 = vpop.f32.mrf.mxu1 }
 0x12d   :  { %v640_v38 = vadd.f32 %v1033_v35, %v570_v37  ;;  %v1068_v39 = vadd.f32 %v1067_v36, %v1066_v31 }
 0x12f   :  { %v710_v44 = vadd.f32 %v1068_v39, %v640_v38 }
 0x14a   :  { %v1101_v40 = vpop.f32.mrf.mxu0 }
 0x14b   :  { %v1136_v41 = vpop.f32.mrf.mxu1 }
 0x14c   :  { %v1102_v42 = vpop.f32.mrf.mxu0 }
 0x14d   :  { %v1137_v43 = vpop.f32.mrf.mxu1  ;;  %v1103_v45 = vadd.f32 %v1102_v42, %v1101_v40 }
 0x14e   :  { %v1138_v47 = vadd.f32 %v1137_v43, %v1136_v41 }
 0x14f   :  { %v780_v46 = vadd.f32 %v1103_v45, %v710_v44 }
 0x151   :  { %v850_v48 = vadd.f32 %v1138_v47, %v780_v46 }
 0x153   :  { %853 = vst [vmem:[%s1984_s3] sm:$0xff] %v850_v48 }

</bundles_post_ra>
